<compile_context>
chip_gen: v7x
topology: tpu7x:2x2x1
jax: 0.10.0
libtpu: 0.0.40
codegen_flags: <defaults>
</compile_context>

<pallas_src>
import jax
import jax.numpy as jnp
from jax.experimental import pallas as pl
from jax.experimental.pallas import tpu as pltpu

HIDDEN = 300          # nn.Linear(state_dim, 300)
LN_EPS = 1e-5         # torch.nn.LayerNorm default eps
TB_MAX = 512          # rows per grid step (multiple of 8, VMEM-friendly on v7x)


def critic_kernel(s_ref, w1_ref, b1_ref, w2g_ref, c_ref, out_ref):
    """One batch tile: out = fc2(LN(relu(fc1(s)))) with LN affine folded into fc2."""
    # fc1 on the MXU: (TB, D) @ (D, 300), f32 accumulate.
    h = jnp.dot(s_ref[...], w1_ref[...], preferred_element_type=jnp.float32)
    h = jnp.maximum(h + b1_ref[...], 0.0)                    # bias + ReLU (VPU)

    # LayerNorm statistics in a single pass over the live hidden vregs.
    inv_n = jnp.float32(1.0 / HIDDEN)
    mean = jnp.sum(h, axis=-1, keepdims=True) * inv_n
    ex2 = jnp.sum(h * h, axis=-1, keepdims=True) * inv_n
    var = jnp.maximum(ex2 - mean * mean, 0.0)                # guard rounding
    xhat = (h - mean) * jax.lax.rsqrt(var + LN_EPS)

    # fc2 (N=1): lane reduction on the VPU/XLU instead of a 1-column MXU matmul.
    # gamma/beta are already folded into w2g / c by the wrapper.
    out_ref[...] = jnp.sum(xhat * w2g_ref[...], axis=-1, keepdims=True) + c_ref[...]


def critic_forward(s, params):
    """s: (B, state_dim) f32.  Returns (B, 1) f32."""
    w1, b1, gamma, beta, w2, b2 = params
    B, D = s.shape

    # Fold LayerNorm affine into fc2:
    #   fc2(gamma*xhat + beta) == sum(xhat * (gamma*w2^T), -1) + (beta @ w2 + b2)
    w2_row = w2.reshape(1, HIDDEN)
    w2g = gamma * w2_row                       # (1, 300)
    c = beta @ w2 + b2                         # (1, 1)

    # Batch tiling: single full-extent block for small B, TB_MAX-row tiles
    # (pipelined + megacore-parallel) otherwise.  Pad B up to a multiple of TB.
    if B <= TB_MAX:
        TB, Bp = B, B
    else:
        TB = TB_MAX
        Bp = pl.cdiv(B, TB) * TB
    s_p = s if Bp == B else jnp.pad(s, ((0, Bp - B), (0, 0)))

    cost = pl.CostEstimate(
        flops=2 * Bp * D * HIDDEN + 8 * Bp * HIDDEN,
        transcendentals=Bp,                                      # rsqrt per row
        bytes_accessed=4 * (Bp * D + Bp + D * HIDDEN + 2 * HIDDEN + 1),
    )

    out = pl.pallas_call(
        critic_kernel,
        out_shape=jax.ShapeDtypeStruct((Bp, 1), jnp.float32),
        grid=(Bp // TB,),
        in_specs=[
            pl.BlockSpec((TB, D), lambda i: (i, 0)),       # s: streamed per tile
            pl.BlockSpec((D, HIDDEN), lambda i: (0, 0)),   # w1: resident
            pl.BlockSpec((1, HIDDEN), lambda i: (0, 0)),   # b1: resident
            pl.BlockSpec((1, HIDDEN), lambda i: (0, 0)),   # gamma*w2^T: resident
            pl.BlockSpec((1, 1), lambda i: (0, 0)),        # beta@w2 + b2: resident
        ],
        out_specs=pl.BlockSpec((TB, 1), lambda i: (i, 0)),
        compiler_params=pltpu.CompilerParams(
            dimension_semantics=("parallel",),             # both TCs on v7x
            vmem_limit_bytes=32 << 20,
        ),
        cost_estimate=cost,
    )(s_p, w1, b1, w2g, c)
    return out[:B]


def init_params(key, state_dim):
    """Deterministic init mimicking torch.nn.Linear (uniform +/- 1/sqrt(fan_in))."""
    k1, k2, k3, k4, k5, k6 = jax.random.split(key, 6)
    bound1 = 1.0 / jnp.sqrt(jnp.float32(state_dim))
    bound2 = 1.0 / jnp.sqrt(jnp.float32(HIDDEN))
    # weights stored pre-transposed: (in_features, out_features)
    w1 = jax.random.uniform(k1, (state_dim, HIDDEN), jnp.float32, -bound1, bound1)
    b1 = jax.random.uniform(k2, (1, HIDDEN), jnp.float32, -bound1, bound1)
    w2 = jax.random.uniform(k3, (HIDDEN, 1), jnp.float32, -bound2, bound2)
    b2 = jax.random.uniform(k4, (1, 1), jnp.float32, -bound2, bound2)
    # torch default LayerNorm is gamma=1, beta=0; perturb here so the test
    # actually exercises the affine-fold path with non-trivial values.
    gamma = 1.0 + 0.1 * jax.random.normal(k5, (1, HIDDEN), jnp.float32)
    beta = 0.1 * jax.random.normal(k6, (1, HIDDEN), jnp.float32)
    return (w1, b1, gamma, beta, w2, b2)


def critic_ref(s, params):
    """Pure-JAX reference for correctness checking (matches torch semantics)."""
    w1, b1, gamma, beta, w2, b2 = params
    h = jnp.maximum(s @ w1 + b1, 0.0)
    mean = jnp.mean(h, axis=-1, keepdims=True)
    var = jnp.mean((h - mean) ** 2, axis=-1, keepdims=True)
    x = (h - mean) * jax.lax.rsqrt(var + LN_EPS) * gamma + beta
    return x @ w2 + b2


if __name__ == "__main__":
    key = jax.random.PRNGKey(0)
    k_param, k_in_small, k_in_big = jax.random.split(key, 3)

    batch, state_dim = 2, 16
    params = init_params(k_param, state_dim)

    # Small-shape run (single full-extent block path).
    s_small = jax.random.normal(k_in_small, (batch, state_dim), jnp.float32)
    out_small = jax.block_until_ready(critic_forward(s_small, params))
    ref_small = critic_ref(s_small, params)
    assert out_small.shape == (batch, 1), out_small.shape
    assert jnp.allclose(out_small, ref_small, atol=1e-4, rtol=1e-4), (out_small, ref_small)

    # Gridded path (multiple batch tiles + padding) to validate the tiling.
    big_batch = 600
    s_big = jax.random.normal(k_in_big, (big_batch, state_dim), jnp.float32)
    out_big = jax.block_until_ready(critic_forward(s_big, params))
    ref_big = critic_ref(s_big, params)
    assert out_big.shape == (big_batch, 1), out_big.shape
    assert jnp.allclose(out_big, ref_big, atol=1e-4, rtol=1e-4)

    print("KERNEL_OK")
</pallas_src>

<mosaic_0001>
module attributes {stable_mosaic.version = 11 : i64} {
  func.func @critic_kernel(%arg0: i32, %arg1: memref<2x16xf32, #tpu.memory_space<vmem>>, %arg2: memref<16x300xf32, #tpu.memory_space<vmem>>, %arg3: memref<1x300xf32, #tpu.memory_space<vmem>>, %arg4: memref<1x300xf32, #tpu.memory_space<vmem>>, %arg5: memref<1x1xf32, #tpu.memory_space<vmem>>, %arg6: memref<2x1xf32, #tpu.memory_space<vmem>>) attributes {dimension_semantics = [#tpu.dimension_semantics<parallel>], iteration_bounds = array<i64: 1>, scalar_prefetch = 0 : i64, scratch_operands = 0 : i64, tpu.core_type = #tpu.core_type<tc>, window_params = [{transform_indices = @transform_0, window_bounds = array<i64: 2, 16>}, {pipeline_mode = #tpu.pipeline_mode<synchronous>, transform_indices = @transform_1, window_bounds = array<i64: 16, 300>}, {pipeline_mode = #tpu.pipeline_mode<synchronous>, transform_indices = @transform_2, window_bounds = array<i64: 1, 300>}, {pipeline_mode = #tpu.pipeline_mode<synchronous>, transform_indices = @transform_3, window_bounds = array<i64: 1, 300>}, {pipeline_mode = #tpu.pipeline_mode<synchronous>, transform_indices = @transform_4, window_bounds = array<i64: 1, 1>}, {transform_indices = @transform_5, window_bounds = array<i64: 2, 1>}]} {
    %c0 = arith.constant 0 : index
    %c0_0 = arith.constant 0 : index
    %0 = vector.load %arg1[%c0, %c0_0] : memref<2x16xf32, #tpu.memory_space<vmem>>, vector<2x16xf32>
    %c0_1 = arith.constant 0 : index
    %c0_2 = arith.constant 0 : index
    %1 = vector.load %arg2[%c0_1, %c0_2] : memref<16x300xf32, #tpu.memory_space<vmem>>, vector<16x300xf32>
    %cst = arith.constant dense<0.000000e+00> : vector<2x300xf32>
    %2 = tpu.matmul %0, %1, %cst {dimension_numbers = #tpu.dot_dimension_numbers<[1], [0], [0], [1], [0, 0, 1, 1], [], []>} : vector<2x16xf32>, vector<16x300xf32>, vector<2x300xf32> -> vector<2x300xf32>
    %c0_3 = arith.constant 0 : index
    %c0_4 = arith.constant 0 : index
    %3 = vector.load %arg3[%c0_3, %c0_4] : memref<1x300xf32, #tpu.memory_space<vmem>>, vector<1x300xf32>
    %4 = vector.broadcast %3 : vector<1x300xf32> to vector<2x300xf32>
    %5 = arith.addf %2, %4 : vector<2x300xf32>
    %cst_5 = arith.constant 0.000000e+00 : f32
    %6 = vector.broadcast %cst_5 : f32 to vector<2x300xf32>
    %7 = arith.maximumf %5, %6 : vector<2x300xf32>
    %cst_6 = arith.constant dense<0.000000e+00> : vector<2xf32>
    %8 = vector.multi_reduction <add>, %7, %cst_6 [1] : vector<2x300xf32> to vector<2xf32>
    %9 = vector.shape_cast %8 : vector<2xf32> to vector<2x1xf32>
    %cst_7 = arith.constant 0.00333333341 : f32
    %10 = vector.broadcast %cst_7 : f32 to vector<2x1xf32>
    %11 = arith.mulf %9, %10 : vector<2x1xf32>
    %12 = arith.mulf %7, %7 : vector<2x300xf32>
    %cst_8 = arith.constant dense<0.000000e+00> : vector<2xf32>
    %13 = vector.multi_reduction <add>, %12, %cst_8 [1] : vector<2x300xf32> to vector<2xf32>
    %14 = vector.shape_cast %13 : vector<2xf32> to vector<2x1xf32>
    %cst_9 = arith.constant 0.00333333341 : f32
    %15 = vector.broadcast %cst_9 : f32 to vector<2x1xf32>
    %16 = arith.mulf %14, %15 : vector<2x1xf32>
    %17 = arith.mulf %11, %11 : vector<2x1xf32>
    %18 = arith.subf %16, %17 : vector<2x1xf32>
    %cst_10 = arith.constant 0.000000e+00 : f32
    %19 = vector.broadcast %cst_10 : f32 to vector<2x1xf32>
    %20 = arith.maximumf %18, %19 : vector<2x1xf32>
    %21 = vector.broadcast %11 : vector<2x1xf32> to vector<2x300xf32>
    %22 = arith.subf %7, %21 : vector<2x300xf32>
    %cst_11 = arith.constant 9.99999974E-6 : f32
    %23 = vector.broadcast %cst_11 : f32 to vector<2x1xf32>
    %24 = arith.addf %20, %23 : vector<2x1xf32>
    %25 = math.rsqrt %24 : vector<2x1xf32>
    %26 = vector.broadcast %25 : vector<2x1xf32> to vector<2x300xf32>
    %27 = arith.mulf %22, %26 : vector<2x300xf32>
    %c0_12 = arith.constant 0 : index
    %c0_13 = arith.constant 0 : index
    %28 = vector.load %arg4[%c0_12, %c0_13] : memref<1x300xf32, #tpu.memory_space<vmem>>, vector<1x300xf32>
    %29 = vector.broadcast %28 : vector<1x300xf32> to vector<2x300xf32>
    %30 = arith.mulf %27, %29 : vector<2x300xf32>
    %cst_14 = arith.constant dense<0.000000e+00> : vector<2xf32>
    %31 = vector.multi_reduction <add>, %30, %cst_14 [1] : vector<2x300xf32> to vector<2xf32>
    %32 = vector.shape_cast %31 : vector<2xf32> to vector<2x1xf32>
    %c0_15 = arith.constant 0 : index
    %c0_16 = arith.constant 0 : index
    %33 = vector.load %arg5[%c0_15, %c0_16] : memref<1x1xf32, #tpu.memory_space<vmem>>, vector<1x1xf32>
    %34 = vector.broadcast %33 : vector<1x1xf32> to vector<2x1xf32>
    %35 = arith.addf %32, %34 : vector<2x1xf32>
    %c0_17 = arith.constant 0 : index
    %c0_18 = arith.constant 0 : index
    %36 = vector.load %arg6[%c0_17, %c0_18] : memref<2x1xf32, #tpu.memory_space<vmem>>, vector<2x1xf32>
    tpu.vector_store %arg6[%c0_17, %c0_18], %35 {strides = array<i32>} : memref<2x1xf32, #tpu.memory_space<vmem>>, vector<2x1xf32>,
    return
  }
  func.func @transform_0(%arg0: i32) -> (i32, i32) {
    %c0_i32 = arith.constant 0 : i32
    %c0_i32_0 = arith.constant 0 : i32
    return %arg0, %c0_i32 : i32, i32
  }
  func.func @transform_1(%arg0: i32) -> (i32, i32) {
    %c0_i32 = arith.constant 0 : i32
    %c0_i32_0 = arith.constant 0 : i32
    %c0_i32_1 = arith.constant 0 : i32
    return %c0_i32, %c0_i32_0 : i32, i32
  }
  func.func @transform_2(%arg0: i32) -> (i32, i32) {
    %c0_i32 = arith.constant 0 : i32
    %c0_i32_0 = arith.constant 0 : i32
    %c0_i32_1 = arith.constant 0 : i32
    return %c0_i32, %c0_i32_0 : i32, i32
  }
  func.func @transform_3(%arg0: i32) -> (i32, i32) {
    %c0_i32 = arith.constant 0 : i32
    %c0_i32_0 = arith.constant 0 : i32
    %c0_i32_1 = arith.constant 0 : i32
    return %c0_i32, %c0_i32_0 : i32, i32
  }
  func.func @transform_4(%arg0: i32) -> (i32, i32) {
    %c0_i32 = arith.constant 0 : i32
    %c0_i32_0 = arith.constant 0 : i32
    %c0_i32_1 = arith.constant 0 : i32
    return %c0_i32, %c0_i32_0 : i32, i32
  }
  func.func @transform_5(%arg0: i32) -> (i32, i32) {
    %c0_i32 = arith.constant 0 : i32
    %c0_i32_0 = arith.constant 0 : i32
    return %arg0, %c0_i32 : i32, i32
  }
}

</mosaic_0001>

<bundles_post_ra>
// kernel: tpu_custom_call.1
= control target key start
LH: loop header
LB: loop body
LE: loop exit
PB: predicated region body
PF: predicated region fallthrough
CT: control target
= control target key end

     0   :  { %s461_s0 = inlined_call_operand.hbm [shape: f32[2,16], index: 0, kind: input, shape index: {}]   ;;  %s462_s1 = inlined_call_operand.hbm [shape: f32[16,300], index: 1, kind: input, shape index: {}]   ;;  %s463_s2 = inlined_call_operand.vmem [shape: f32[1,300], index: 2, kind: input, shape index: {}]   ;;  %s464_s3 = inlined_call_operand.vmem [shape: f32[1,300], index: 3, kind: input, shape index: {}]   ;;  %s465_s4 = inlined_call_operand.<no memory space> [shape: f32[1,1], index: 4, kind: input, shape index: {}]   ;;  %s466_s5 = inlined_call_operand.vmem [shape: f32[2,1], index: 5, kind: output, shape index: {}]  }
   0x1   :  { %v10_v0 = vstv %s465_s4 }
   0x2   :  { %11 = vst [vmem:[#allocation2] sm:$0x1] %v10_v0 }
   0x3   :  { %12 = vsyncpa [#allocation4], 0 }
   0x4   :  { %13 = vsyncpa [#allocation6], 0  ;;  %s372_s20 = smov [#allocation3]   ;;  %s373_s22 = smov [#allocation5]  }
   0x5   :  { %s20_s21 = sshll.u32 %s372_s20, 4  ;;  %s29_s23 = sshll.u32 %s373_s22, 4  ;;  %s21_s21 = int_to_ptr.vmem [resolvable:$true] %s20_s21  ;;  %s412_s23 = int_to_ptr.vmem [resolvable:$true] %s29_s23 }
   0x6   :  { %s324_s26 = scalar_lea.hbm %s461_s0, 32 }
   0x7   :  { %p325_p0 = scmp.ne.s32.totalorder %s461_s0, %s324_s26  ;;  %p328_p1 = scmp.lt.u32.totalorder %s324_s26, %s461_s0 }
   0x9   :  { %p330_p2 = pnand %p328_p1, %p325_p0 }
   0xb   :  { %333 = shalt.err (!%p330_p2)
}
   0xc   :  { %s334_s30 = scalar_lea.vmem %s21_s21, 32  ;;  %p339_p4 = scmp.lt.s32.totalorder %s21_s21, %s21_s21 }
   0xd   :  { %p335_p3 = scmp.ne.s32.totalorder %s21_s21, %s334_s30  ;;  %p340_p5 = scmp.lt.s32.totalorder %s334_s30, %s334_s30 }
   0xf   :  { %p341_p6 = por %p340_p5, %p339_p4 }
  0x11   :  { %p342_p7 = pnand %p341_p6, %p335_p3 }
  0x13   :  { %345 = shalt.err (!%p342_p7)
}
  0x14   :  { %23 = dma.hbm_to_vmem [thread:$0]  %s461_s0, 32, %s21_s21, [#allocation4]  }
  0x15   :  { %s346_s10 = scalar_lea.hbm %s462_s1, 768 }
  0x16   :  { %p347_p8 = scmp.ne.s32.totalorder %s462_s1, %s346_s10  ;;  %p350_p9 = scmp.lt.u32.totalorder %s346_s10, %s462_s1 }
  0x18   :  { %p352_p10 = pnand %p350_p9, %p347_p8 }
  0x1a   :  { %355 = shalt.err (!%p352_p10)
}
  0x1b   :  { %s356_s15 = scalar_lea.vmem %s412_s23, 768  ;;  %p361_p12 = scmp.lt.s32.totalorder %s412_s23, %s412_s23 }
  0x1c   :  { %p357_p11 = scmp.ne.s32.totalorder %s412_s23, %s356_s15  ;;  %p362_p13 = scmp.lt.s32.totalorder %s356_s15, %s356_s15 }
  0x1e   :  { %p363_p0 = por %p362_p13, %p361_p12 }
  0x20   :  { %p364_p1 = pnand %p363_p0, %p357_p11 }
  0x22   :  { %367 = shalt.err (!%p364_p1)
}
  0x23   :  { %s374_s0 = smov 384   ;;  %s375_s16 = smov 24  }
  0x24   :  { %35 = dma.hbm_to_vmem [thread:$0]  %s462_s1, 768, %s412_s23, [#allocation6], %s374_s0, %s374_s0, %s375_s16  }
  0x25   :  { %368 = dma.done.wait [#allocation4], 32  }
  0x26   :  { %369 = vsyncadd [#allocation4], 4294967264 }
  0x27   :  { %370 = dma.done.wait [#allocation6], 768  }
  0x28   :  { %371 = vsyncadd [#allocation6], 4294966528  ;;  %v376_v1 = vmov 0.0|0.0   ;;  %v377_v2 = vmov 0.0   ;;  %vm378_vm0 = vmmov 0   ;;  %v50_v3 = vld [vmem:[#allocation5 + $0x8] sm:$0xff]  ;;  %v57_v13 = vlaneseq }
  0x29   :  { %312 = vmatprep.subr.bf16.mxu1 %v376_v1  ;;  %140 = vmatprep.mubr.f32.mxu0 %v377_v2  ;;  %v53_v4 = vld [vmem:[#allocation5 + $0x20] sm:$0xff]  ;;  %v52_v7 = vld [vmem:[#allocation5 + $0x18] sm:$0xff]  ;;  %v51_v8 = vld [vmem:[#allocation5 + $0x10] sm:$0xff]  ;;  %vm72_vm1 = vcmask 130048   ;;  %vm220_vm2 = vcmask 1041408   ;;  %vm224_vm3 = vcmask 353280  }
  0x2a   :  { %305 = vmatprep.mubr.msk.f32.mxu1 %vm378_vm0, %v377_v2  ;;  %v49_v5 = vld [vmem:[#allocation5] sm:$0xff]  ;;  %v308_v6 = vpack.c.bf16 %v53_v4, %v50_v3  ;;  %v54_v9 = vld [vmem:[#allocation5 + $0x28] sm:$0xff]  ;;  %v48_v12 = vld [vmem:[#allocation3] sm:$0x3]  ;;  %v58_v14 = vshrl.u32 %v57_v13, 7  ;;  %vm287_vm4 = vcmask 1024  }
  0x2b   :  { %v310_v10 = vpack.c.bf16 %v52_v7, %v49_v5  ;;  %v313_v11 = vpack.c.bf16 %v54_v9, %v51_v8  ;;  %v55_v17 = vld [vmem:[%s463_s2] sm:$0x7] }
  0x2c   :  { %309 = vmatprep.subr.bf16.mxu0 %v308_v6  ;;  %v59_v15 = vsub.s32 0, %v58_v14  ;;  %v67_v16 = vsub.s32 2, %v58_v14  ;;  %v63_v18 = vsub.s32 1, %v58_v14  ;;  %v252_v53 = vld [vmem:[%s464_s3] sm:$0x7] }
  0x2d   :  { %311 = vmatpush1.bf16.msra.mxu0 %v310_v10  ;;  %314 = vmatpush3.bf16.msra.mxu1 %v313_v11  ;;  %v297_v8 = vld [vmem:[#allocation2] ss:$0 sm:$0xff] }
  0x2e   :  { %v60_v19 = vrot.slane %v55_v17, %v59_v15  ;;  %v68_v20 = vrot.slane %v55_v17, %v67_v16  ;;  %v64_v21 = vrot.slane %v55_v17, %v63_v18  ;;  %v257_v54 = vrot.slane %v252_v53, %v59_v15 }
  0x2f   :  { %v261_v55 = vrot.slane %v252_v53, %v63_v18  ;;  %v265_v59 = vrot.slane %v252_v53, %v67_v16 }
  0x30   :  { %295 = vmatmul.mubr.msk.f32.vlgmr.msra.gmra.mrb[0].mxu0 %vm72_vm1, %v48_v12  ;;  %306 = vmatmul.mubr.msk.f32.vlgmr.msra.gmra.mrb[0].mxu1 %vm72_vm1, %v48_v12 }
 0x103   :  { %v142_v22 = vpop.f32.mrb[0].mxu0  ;;  %v213_v23 = vpop.f32.mrb[0].mxu1 }
 0x104   :  { %v143_v24 = vadd.f32 %v142_v22, %v60_v19  ;;  %v144_v25 = vpop.f32.mrb[1].mxu0  ;;  %v214_v26 = vadd.f32 %v213_v23, %v68_v20  ;;  %v307_v27 = vpop.f32.mrb[1].mxu1 }
 0x105   :  { %v145_v28 = vadd.f32 %v144_v25, %v64_v21 }
 0x106   :  { %v217_v29 = vmax.f32 %v143_v24, 0.0  ;;  %v219_v30 = vmax.f32 %v214_v26, 0.0 }
 0x107   :  { %v218_v31 = vmax.f32 %v145_v28, 0.0 }
 0x108   :  { %v230_v32 = vmul.f32 %v217_v29, %v217_v29  ;;  %v221_v33 = vsel %vm220_vm2, %v217_v29, 0.0  ;;  %v225_v36 = vsel %vm224_vm3, %v219_v30, 0.0  ;;  %v232_v37 = vmul.f32 %v219_v30, %v219_v30 }
 0x109   :  { %v231_v34 = vmul.f32 %v218_v31, %v218_v31  ;;  %v222_v35 = vsel %vm220_vm2, %v218_v31, 0.0 }
 0x10a   :  { %v223_v38 = vadd.f32 %v222_v35, %v221_v33  ;;  %v233_v39 = vsel %vm220_vm2, %v230_v32, 0.0  ;;  %v236_v43 = vsel %vm224_vm3, %v232_v37, 0.0 }
 0x10b   :  { %v234_v40 = vsel %vm220_vm2, %v231_v34, 0.0 }
 0x10c   :  { %v226_v41 = vadd.f32 %v225_v36, %v223_v38  ;;  %v235_v42 = vadd.f32 %v234_v40, %v233_v39 }
 0x10e   :  { %227 = vadd.xlane.f32.xlu0 %v226_v41  ;;  %v237_v44 = vadd.f32 %v236_v43, %v235_v42 }
 0x112   :  { %238 = vadd.xlane.f32.xlu0 %v237_v44 }
 0x19b   :  { %v228_v45 = vpop.xlane.xlu0 %227 }
 0x19c   :  { %v229_v46 = vmul.f32 0.0033333334, %v228_v45 }
 0x19e   :  { %v241_v48 = vmul.f32 %v229_v46, %v229_v46  ;;  %v244_v56 = vsub.f32 %v217_v29, %v229_v46  ;;  %v245_v57 = vsub.f32 %v218_v31, %v229_v46  ;;  %v246_v58 = vsub.f32 %v219_v30, %v229_v46 }
 0x19f   :  { %v239_v47 = vpop.xlane.xlu0 %238 }
 0x1a0   :  { %v240_v49 = vmul.f32 0.0033333334, %v239_v47 }
 0x1a2   :  { %v242_v50 = vsub.f32 %v240_v49, %v241_v48 }
 0x1a4   :  { %v243_v51 = vmax.f32 %v242_v50, 0.0 }
 0x1a6   :  { %v247_v52 = vadd.f32 1e-05, %v243_v51 }
 0x1a8   :  { %322 = vrsqrt.f32 %v247_v52 }
 0x1b2   :  { %v323_v60 = vpop.eup %322 }
 0x1b3   :  { %v249_v61 = vmul.f32 %v323_v60, %v244_v56  ;;  %v250_v62 = vmul.f32 %v323_v60, %v245_v57  ;;  %v251_v63 = vmul.f32 %v323_v60, %v246_v58 }
 0x1b5   :  { %v269_v0 = vmul.f32 %v257_v54, %v249_v61  ;;  %v270_v1 = vmul.f32 %v261_v55, %v250_v62  ;;  %v271_v2 = vmul.f32 %v265_v59, %v251_v63 }
 0x1b7   :  { %v272_v3 = vsel %vm220_vm2, %v269_v0, 0.0  ;;  %v273_v4 = vsel %vm220_vm2, %v270_v1, 0.0  ;;  %v275_v6 = vsel %vm224_vm3, %v271_v2, 0.0 }
 0x1b8   :  { %v274_v5 = vadd.f32 %v273_v4, %v272_v3 }
 0x1ba   :  { %v276_v7 = vadd.f32 %v275_v6, %v274_v5 }
 0x1bc   :  { %277 = vadd.xlane.f32.xlu1 %v276_v7 }
 0x249   :  { %v278_v9 = vpop.xlane.xlu1 %277 }
 0x24a   :  { %v286_v10 = vadd.f32 %v297_v8, %v278_v9 }
 0x24c   :  { %288 = vst.msk [vmem:[%s466_s5] sm:$0x3] %vm287_vm4, %v286_v10 }
 0x24d   :  { %293 = vsyncpa [#allocation4], 1 }
 0x24e   :  { %294 = vsyncpa [#allocation6], 1 }

</bundles_post_ra>
